<compile_context>
chip_gen: v7x
topology: tpu7x:2x2x1
jax: 0.10.0
libtpu: 0.0.40
codegen_flags: <defaults>
</compile_context>

<pallas_src>
import functools

import jax
import jax.numpy as jnp
from jax import lax
from jax.experimental import pallas as pl
from jax.experimental.pallas import tpu as pltpu


# ----------------------------------------------------------------------------
# small helpers
# ----------------------------------------------------------------------------
def _round_up(x: int, m: int) -> int:
    return ((x + m - 1) // m) * m


def _choose_tile(dim: int, target: int, align: int) -> int:
    """Tile size: a multiple of `align`, never larger than needed."""
    if dim <= target:
        return _round_up(dim, align)
    return _round_up(target, align)


def _pad_to(x, shape, value=0):
    pads = [(0, t - s) for s, t in zip(x.shape, shape)]
    if all(p == (0, 0) for p in pads):
        return x
    return jnp.pad(x, pads, constant_values=value)


# ----------------------------------------------------------------------------
# Kernel 1: tiled dense linear  y = x @ W + b   (bf16 MXU inputs, f32 acc)
# ----------------------------------------------------------------------------
def _linear_kernel(x_ref, w_ref, b_ref, o_ref, acc_ref):
    k = pl.program_id(2)

    @pl.when(k == 0)
    def _init():
        acc_ref[...] = jnp.zeros_like(acc_ref)

    acc_ref[...] += jnp.dot(x_ref[...], w_ref[...],
                            preferred_element_type=jnp.float32)

    @pl.when(k == pl.num_programs(2) - 1)
    def _finalize():
        o_ref[...] = (acc_ref[...] + b_ref[...]).astype(o_ref.dtype)


def linear(x2d, w, b, *, out_dtype=jnp.float32, tm=256, tn=256, tk=512):
    """x2d: (M, K), w: (K, N), b: (N,) -> (M, N) in `out_dtype`.

    Inputs are cast to bf16 (2-4x MXU rate, half the HBM traffic); the
    accumulator and bias stay f32.  Dims that don't divide the tiles are
    zero-padded and the result is sliced back.
    # TODO(synk): grow tn/tk to 512 on v5e/v6e (128 MiB VMEM); keep 256x256x512 on v7x.
    """
    M, K = x2d.shape
    N = w.shape[1]
    tm = _choose_tile(M, tm, 64)
    tn = _choose_tile(N, tn, 128)
    tk = _choose_tile(K, tk, 128)
    Mp, Kp, Np = _round_up(M, tm), _round_up(K, tk), _round_up(N, tn)

    xb = _pad_to(x2d.astype(jnp.bfloat16), (Mp, Kp))
    wb = _pad_to(w.astype(jnp.bfloat16), (Kp, Np))
    bb = _pad_to(b.astype(jnp.float32).reshape(1, N), (1, Np))

    out = pl.pallas_call(
        _linear_kernel,
        out_shape=jax.ShapeDtypeStruct((Mp, Np), out_dtype),
        grid=(Mp // tm, Np // tn, Kp // tk),
        in_specs=[
            pl.BlockSpec((tm, tk), lambda i, j, k: (i, k)),
            pl.BlockSpec((tk, tn), lambda i, j, k: (k, j)),
            pl.BlockSpec((1, tn), lambda i, j, k: (0, j)),
        ],
        out_specs=pl.BlockSpec((tm, tn), lambda i, j, k: (i, j)),
        scratch_shapes=[pltpu.VMEM((tm, tn), jnp.float32)],
        compiler_params=pltpu.CompilerParams(
            dimension_semantics=("parallel", "parallel", "arbitrary")),
    )(xb, wb, bb)

    if (Mp, Np) != (M, N):
        out = out[:M, :N]
    return out


# ----------------------------------------------------------------------------
# Kernel 2: flash-style scaled dot-product attention
#   grid = (batch, q-block, kv-block); heads are sliced along the lane dim
#   inside the kernel, so Q/K/V/out blocks are lane-dense (tq|tkv, H*Dh) and
#   no XLA transposes are needed around the kernel.  Running max / denom /
#   accumulator live in VMEM scratch across the KV axis (online softmax).
#   Fully-masked KV blocks are skipped via scalar-prefetched flags.
# ----------------------------------------------------------------------------
def _flash_attn_kernel(flags_ref, q_ref, k_ref, v_ref, mask_ref, o_ref,
                       m_ref, l_ref, acc_ref, *, n_heads, head_dim, nq, nk):
    b = pl.program_id(0)
    qi = pl.program_id(1)
    kv = pl.program_id(2)

    @pl.when(kv == 0)
    def _init():
        m_ref[...] = jnp.full_like(m_ref, -jnp.inf)
        l_ref[...] = jnp.zeros_like(l_ref)
        acc_ref[...] = jnp.zeros_like(acc_ref)

    # Skip fully-masked KV blocks (their softmax weight underflows to exactly
    # 0 in f32 anyway, so skipping is numerically identical for any query row
    # that has at least one visible key).
    needed = flags_ref[(b * nq + qi) * nk + kv] > 0

    @pl.when(needed)
    def _compute():
        mask_blk = mask_ref[...] != 0                    # (tq, tkv), True == masked
        for h in range(n_heads):                         # static unroll over heads
            sl = pl.ds(h * head_dim, head_dim)
            q_h = q_ref[:, sl]                           # (tq, Dh)  bf16 (scale folded into W_q)
            k_h = k_ref[:, sl]                           # (tkv, Dh) bf16
            s = lax.dot_general(q_h, k_h, (((1,), (1,)), ((), ())),
                                preferred_element_type=jnp.float32)   # (tq, tkv) f32
            s = jnp.where(mask_blk, jnp.float32(-1e9), s)

            m_prev = m_ref[:, h:h + 1]                   # (tq, 1) f32
            m_new = jnp.maximum(m_prev, jnp.max(s, axis=-1, keepdims=True))
            alpha = jnp.exp(m_prev - m_new)
            p = jnp.exp(s - m_new)                       # (tq, tkv) f32
            l_ref[:, h:h + 1] = alpha * l_ref[:, h:h + 1] + jnp.sum(
                p, axis=-1, keepdims=True)
            acc_ref[h] = alpha * acc_ref[h] + jnp.dot(
                p.astype(v_ref.dtype), v_ref[:, sl],
                preferred_element_type=jnp.float32)      # (tq, Dh) f32
            m_ref[:, h:h + 1] = m_new

    @pl.when(kv == nk - 1)
    def _finalize():
        for h in range(n_heads):
            l_h = l_ref[:, h:h + 1]
            inv = pl.reciprocal(l_h, approx=True)        # EUP slot (otherwise idle)
            inv = inv * (2.0 - l_h * inv)                # one Newton step -> ~f32 exact
            o_ref[:, pl.ds(h * head_dim, head_dim)] = (
                acc_ref[h] * inv).astype(o_ref.dtype)


def flash_attention(q, k, v, attn_mask, n_heads, head_dim, *, tq=256, tkv=256):
    """q, k, v: (B, S, n_heads*head_dim) (preferably bf16);
    attn_mask: (B, Sq, Sk) bool, True == masked.  Returns (B, Sq, n_heads*head_dim).

    Note: query rows that are masked against *every* key get garbage (the
    PyTorch reference returns uniform attention there) — degenerate case.
    # TODO(synk): on v5e use pipeline_mode=pl.Buffered(3) on the K/V specs.
    """
    B, Sq, D = q.shape
    Sk = k.shape[1]
    assert D == n_heads * head_dim

    tq = _choose_tile(Sq, tq, 32)      # 32-aligned for int8 mask sublane packing
    tkv = _choose_tile(Sk, tkv, 128)
    Sqp, Skp = _round_up(Sq, tq), _round_up(Sk, tkv)
    nq, nk = Sqp // tq, Skp // tkv

    qp = _pad_to(q, (B, Sqp, D))
    kp = _pad_to(k, (B, Skp, D))
    vp = _pad_to(v, (B, Skp, D))
    mp = _pad_to(attn_mask, (B, Sqp, Skp), value=True)   # padding is masked

    # per-(b, q-block, kv-block) "block needed" flags for the skip path.
    needed = jnp.logical_not(
        jnp.all(mp.reshape(B, nq, tq, nk, tkv), axis=(2, 4))
    ).astype(jnp.int32).reshape(-1)

    q2 = qp.reshape(B * Sqp, D)
    k2 = kp.reshape(B * Skp, D)
    v2 = vp.reshape(B * Skp, D)
    mask2 = mp.reshape(B * Sqp, Skp).astype(jnp.int8)     # 4x less HBM than int32

    # Scoped-VMEM budget sized to the actual double-buffered blocks + scratch.
    d_lanes = _round_up(D, 128)
    dh_lanes = _round_up(head_dim, 128)
    tkv_lanes = _round_up(tkv, 128)
    bytes_blocks = 2 * (tq * d_lanes * q2.dtype.itemsize          # Q
                        + 2 * tkv * d_lanes * k2.dtype.itemsize   # K + V
                        + tq * tkv_lanes * 1                      # mask (int8)
                        + tq * d_lanes * q2.dtype.itemsize)       # out
    bytes_scratch = 4 * (2 * tq * 128 + n_heads * tq * dh_lanes)
    vmem_limit = int(min(max(bytes_blocks + bytes_scratch + (8 << 20),
                             32 << 20), 64 << 20))

    grid_spec = pltpu.PrefetchScalarGridSpec(
        num_scalar_prefetch=1,
        grid=(B, nq, nk),
        in_specs=[
            pl.BlockSpec((tq, D), lambda b, qi, kv, flags: (b * nq + qi, 0)),
            pl.BlockSpec((tkv, D), lambda b, qi, kv, flags: (b * nk + kv, 0)),
            pl.BlockSpec((tkv, D), lambda b, qi, kv, flags: (b * nk + kv, 0)),
            pl.BlockSpec((tq, tkv), lambda b, qi, kv, flags: (b * nq + qi, kv)),
        ],
        out_specs=pl.BlockSpec((tq, D), lambda b, qi, kv, flags: (b * nq + qi, 0)),
        scratch_shapes=[
            pltpu.VMEM((tq, n_heads), jnp.float32),          # running max
            pltpu.VMEM((tq, n_heads), jnp.float32),          # running denominator
            pltpu.VMEM((n_heads, tq, head_dim), jnp.float32),  # output accumulator
        ],
    )

    out = pl.pallas_call(
        functools.partial(_flash_attn_kernel, n_heads=n_heads,
                          head_dim=head_dim, nq=nq, nk=nk),
        out_shape=jax.ShapeDtypeStruct((B * Sqp, D), q.dtype),
        grid_spec=grid_spec,
        compiler_params=pltpu.CompilerParams(
            dimension_semantics=("parallel", "parallel", "arbitrary"),
            vmem_limit_bytes=vmem_limit),
    )(needed, q2, k2, v2, mask2)

    out = out.reshape(B, Sqp, D)
    if Sqp != Sq:
        out = out[:, :Sq, :]
    return out


# ----------------------------------------------------------------------------
# MultiHeadAttention forward (glue in plain JAX, hot paths in Pallas)
# ----------------------------------------------------------------------------
def multi_head_attention(params, query, key, value, attn_mask, n_heads, head_dim):
    assert attn_mask.dtype == jnp.bool_, \
        "attn_mask must be boolean with True == masked (PyTorch masked_fill semantics)"
    B, Sq, hidden = query.shape
    Sk = key.shape[1]
    D = n_heads * head_dim

    # Fold 1/sqrt(head_dim) into the Q projection (free; removes per-kv-step scaling).
    inv_scale = 1.0 / (float(head_dim) ** 0.5)
    w_q = params["w_q"] * inv_scale
    b_q = params["b_q"] * inv_scale

    # Q/K/V projections (tiled Pallas matmuls, bf16 outputs feed attention directly)
    q = linear(query.reshape(B * Sq, hidden), w_q, b_q, out_dtype=jnp.bfloat16)
    k = linear(key.reshape(B * Sk, hidden), params["w_k"], params["b_k"],
               out_dtype=jnp.bfloat16)
    v = linear(value.reshape(B * Sk, hidden), params["w_v"], params["b_v"],
               out_dtype=jnp.bfloat16)

    # Keep (B, S, H*Dh) layout end-to-end: heads are sliced in-kernel, so there
    # are no XLA head-split/merge transposes and no extra HBM round trips.
    q = q.reshape(B, Sq, D)
    k = k.reshape(B, Sk, D)
    v = v.reshape(B, Sk, D)

    ctx = flash_attention(q, k, v, attn_mask, n_heads, head_dim)   # (B, Sq, D) bf16

    # output projection (tiled Pallas matmul); dropout(rate=0) == identity
    out = linear(ctx.reshape(B * Sq, D), params["w_o"], params["b_o"],
                 out_dtype=jnp.float32)
    return out.reshape(B, Sq, hidden)


# ----------------------------------------------------------------------------
# Deterministic parameter init (PyTorch nn.Linear-style uniform bounds)
# ----------------------------------------------------------------------------
def init_params(key, hidden_dim, n_heads, head_dim):
    D = n_heads * head_dim
    ks = jax.random.split(key, 8)

    def lin_init(kw, kb, fan_in, fan_out):
        bound = 1.0 / (fan_in ** 0.5)
        w = jax.random.uniform(kw, (fan_in, fan_out), jnp.float32, -bound, bound)
        b = jax.random.uniform(kb, (fan_out,), jnp.float32, -bound, bound)
        return w, b

    w_q, b_q = lin_init(ks[0], ks[1], hidden_dim, D)
    w_k, b_k = lin_init(ks[2], ks[3], hidden_dim, D)
    w_v, b_v = lin_init(ks[4], ks[5], hidden_dim, D)
    w_o, b_o = lin_init(ks[6], ks[7], D, hidden_dim)
    return dict(w_q=w_q, b_q=b_q, w_k=w_k, b_k=b_k,
                w_v=w_v, b_v=b_v, w_o=w_o, b_o=b_o)


# ----------------------------------------------------------------------------
# Pure-JAX f32 reference for correctness checking
# ----------------------------------------------------------------------------
def reference(params, query, key, value, attn_mask, n_heads, head_dim):
    B, Sq, Hd = query.shape
    Sk = key.shape[1]
    D = n_heads * head_dim
    q = (query @ params["w_q"] + params["b_q"]).reshape(B, Sq, n_heads, head_dim)
    k = (key @ params["w_k"] + params["b_k"]).reshape(B, Sk, n_heads, head_dim)
    v = (value @ params["w_v"] + params["b_v"]).reshape(B, Sk, n_heads, head_dim)
    q = q.transpose(0, 2, 1, 3); k = k.transpose(0, 2, 1, 3); v = v.transpose(0, 2, 1, 3)
    score = jnp.einsum("bhqd,bhkd->bhqk", q, k) / (head_dim ** 0.5)
    score = jnp.where(attn_mask[:, None, :, :], -1e9, score)
    p = jax.nn.softmax(score, axis=-1)
    ctx = jnp.einsum("bhqk,bhkd->bhqd", p, v).transpose(0, 2, 1, 3).reshape(B, Sq, D)
    return ctx @ params["w_o"] + params["b_o"]


if __name__ == "__main__":
    B, S, hidden_dim = 2, 8, 32
    n_heads, head_dim = 4, 8

    root = jax.random.PRNGKey(0)
    kp, k_q, k_k, k_v = jax.random.split(root, 4)

    params = init_params(kp, hidden_dim, n_heads, head_dim)
    query = jax.random.normal(k_q, (B, S, hidden_dim), jnp.float32)
    key = jax.random.normal(k_k, (B, S, hidden_dim), jnp.float32)
    value = jax.random.normal(k_v, (B, S, hidden_dim), jnp.float32)
    # boolean mask: True == masked position (causal mask)
    attn_mask = jnp.triu(jnp.ones((S, S), jnp.bool_), k=1)[None].repeat(B, axis=0)

    out = multi_head_attention(params, query, key, value, attn_mask,
                               n_heads, head_dim)
    out = jax.block_until_ready(out)

    ref = reference(params, query, key, value, attn_mask, n_heads, head_dim)
    assert out.shape == (B, S, hidden_dim)
    max_err = float(jnp.max(jnp.abs(out - ref)))
    # bf16 matmul inputs with f32 accumulation -> loosened tolerance vs f32 ref
    assert jnp.allclose(out, ref, atol=5e-2, rtol=5e-2), \
        f"mismatch vs reference (max abs err {max_err})"

    print("KERNEL_OK")
</pallas_src>

<mosaic_0001>
module attributes {stable_mosaic.version = 11 : i64} {
  func.func @_linear_kernel(%arg0: i32, %arg1: i32, %arg2: i32, %arg3: memref<64x128xbf16, #tpu.memory_space<vmem>>, %arg4: memref<128x128xbf16, #tpu.memory_space<vmem>>, %arg5: memref<1x128xf32, #tpu.memory_space<vmem>>, %arg6: memref<64x128xbf16, #tpu.memory_space<vmem>>, %arg7: memref<64x128xf32, #tpu.memory_space<vmem>>) attributes {dimension_semantics = [#tpu.dimension_semantics<parallel>, #tpu.dimension_semantics<parallel>, #tpu.dimension_semantics<arbitrary>], iteration_bounds = array<i64: 1, 1, 1>, scalar_prefetch = 0 : i64, scratch_operands = 1 : i64, tpu.core_type = #tpu.core_type<tc>, window_params = [{transform_indices = @transform_0, window_bounds = array<i64: 64, 128>}, {transform_indices = @transform_1, window_bounds = array<i64: 128, 128>}, {transform_indices = @transform_2, window_bounds = array<i64: 1, 128>}, {transform_indices = @transform_3, window_bounds = array<i64: 64, 128>}]} {
    %c0_i32 = arith.constant 0 : i32
    %0 = arith.cmpi eq, %arg2, %c0_i32 : i32
    %1 = arith.extui %0 : i1 to i32
    %c0_i32_0 = arith.constant 0 : i32
    %2 = arith.cmpi ne, %1, %c0_i32_0 : i32
    scf.if %2 {
      %cst_10 = arith.constant 0.000000e+00 : f32
      %12 = vector.broadcast %cst_10 : f32 to vector<64x128xf32>
      %c0_11 = arith.constant 0 : index
      %c0_12 = arith.constant 0 : index
      %13 = vector.load %arg7[%c0_11, %c0_12] : memref<64x128xf32, #tpu.memory_space<vmem>>, vector<64x128xf32>
      tpu.vector_store %arg7[%c0_11, %c0_12], %12 {strides = array<i32>} : memref<64x128xf32, #tpu.memory_space<vmem>>, vector<64x128xf32>,
    } else {
    }
    %c0 = arith.constant 0 : index
    %c0_1 = arith.constant 0 : index
    %3 = vector.load %arg7[%c0, %c0_1] : memref<64x128xf32, #tpu.memory_space<vmem>>, vector<64x128xf32>
    %c0_2 = arith.constant 0 : index
    %c0_3 = arith.constant 0 : index
    %4 = vector.load %arg3[%c0_2, %c0_3] : memref<64x128xbf16, #tpu.memory_space<vmem>>, vector<64x128xbf16>
    %c0_4 = arith.constant 0 : index
    %c0_5 = arith.constant 0 : index
    %5 = vector.load %arg4[%c0_4, %c0_5] : memref<128x128xbf16, #tpu.memory_space<vmem>>, vector<128x128xbf16>
    %cst = arith.constant dense<0.000000e+00> : vector<64x128xf32>
    %6 = tpu.matmul %4, %5, %cst {dimension_numbers = #tpu.dot_dimension_numbers<[1], [0], [0], [1], [0, 0, 1, 1], [], []>} : vector<64x128xbf16>, vector<128x128xbf16>, vector<64x128xf32> -> vector<64x128xf32>
    %7 = arith.addf %3, %6 : vector<64x128xf32>
    %c0_6 = arith.constant 0 : index
    %c0_7 = arith.constant 0 : index
    %8 = vector.load %arg7[%c0_6, %c0_7] : memref<64x128xf32, #tpu.memory_space<vmem>>, vector<64x128xf32>
    tpu.vector_store %arg7[%c0_6, %c0_7], %7 {strides = array<i32>} : memref<64x128xf32, #tpu.memory_space<vmem>>, vector<64x128xf32>,
    %c0_i32_8 = arith.constant 0 : i32
    %9 = arith.cmpi eq, %arg2, %c0_i32_8 : i32
    %10 = arith.extui %9 : i1 to i32
    %c0_i32_9 = arith.constant 0 : i32
    %11 = arith.cmpi ne, %10, %c0_i32_9 : i32
    scf.if %11 {
      %c0_10 = arith.constant 0 : index
      %c0_11 = arith.constant 0 : index
      %12 = vector.load %arg7[%c0_10, %c0_11] : memref<64x128xf32, #tpu.memory_space<vmem>>, vector<64x128xf32>
      %c0_12 = arith.constant 0 : index
      %c0_13 = arith.constant 0 : index
      %13 = vector.load %arg5[%c0_12, %c0_13] : memref<1x128xf32, #tpu.memory_space<vmem>>, vector<1x128xf32>
      %14 = vector.broadcast %13 : vector<1x128xf32> to vector<64x128xf32>
      %15 = arith.addf %12, %14 : vector<64x128xf32>
      %16 = arith.truncf %15 : vector<64x128xf32> to vector<64x128xbf16>
      %c0_14 = arith.constant 0 : index
      %c0_15 = arith.constant 0 : index
      %17 = vector.load %arg6[%c0_14, %c0_15] : memref<64x128xbf16, #tpu.memory_space<vmem>>, vector<64x128xbf16>
      tpu.vector_store %arg6[%c0_14, %c0_15], %16 {strides = array<i32>} : memref<64x128xbf16, #tpu.memory_space<vmem>>, vector<64x128xbf16>,
    } else {
    }
    return
  }
  func.func @transform_0(%arg0: i32, %arg1: i32, %arg2: i32) -> (i32, i32) {
    %c0_i32 = arith.constant 0 : i32
    return %arg0, %arg2 : i32, i32
  }
  func.func @transform_1(%arg0: i32, %arg1: i32, %arg2: i32) -> (i32, i32) {
    %c0_i32 = arith.constant 0 : i32
    return %arg2, %arg1 : i32, i32
  }
  func.func @transform_2(%arg0: i32, %arg1: i32, %arg2: i32) -> (i32, i32) {
    %c0_i32 = arith.constant 0 : i32
    %c0_i32_0 = arith.constant 0 : i32
    return %c0_i32, %arg1 : i32, i32
  }
  func.func @transform_3(%arg0: i32, %arg1: i32, %arg2: i32) -> (i32, i32) {
    %c0_i32 = arith.constant 0 : i32
    return %arg0, %arg1 : i32, i32
  }
}

</mosaic_0001>

<bundles_post_ra>
// kernel: tpu_custom_call.1
= control target key start
LH: loop header
LB: loop body
LE: loop exit
PB: predicated region body
PF: predicated region fallthrough
CT: control target
= control target key end

     0   :  { %8 = vsyncpa [#allocation4], 0  ;;  %s591_s0 = inlined_call_operand.hbm [shape: bf16[64,128], index: 0, kind: input, shape index: {}]   ;;  %s592_s1 = inlined_call_operand.hbm [shape: bf16[128,128], index: 1, kind: input, shape index: {}]   ;;  %s593_s2 = inlined_call_operand.vmem [shape: f32[1,128], index: 2, kind: input, shape index: {}]   ;;  %s594_s3 = inlined_call_operand.hbm [shape: bf16[64,128], index: 3, kind: output, shape index: {}]  }
   0x1   :  { %9 = vsyncpa [#allocation7], 0 }
   0x2   :  { %10 = vsyncpa [#allocation5], 0  ;;  %s518_s12 = smov [#allocation3]   ;;  %s446_s16 = scalar_lea.hbm %s591_s0, 512 }
   0x3   :  { %s16_s13 = sshll.u32 %s518_s12, 4  ;;  %p447_p0 = scmp.ne.s32.totalorder %s591_s0, %s446_s16  ;;  %s17_s13 = int_to_ptr.vmem [resolvable:$true] %s16_s13 }
   0x4   :  { %p450_p1 = scmp.lt.u32.totalorder %s446_s16, %s591_s0 }
   0x6   :  { %p452_p2 = pnand %p450_p1, %p447_p0 }
   0x8   :  { %455 = shalt.err (!%p452_p2)
}
   0x9   :  { %s456_s21 = scalar_lea.vmem %s17_s13, 512  ;;  %p461_p4 = scmp.lt.s32.totalorder %s17_s13, %s17_s13 }
   0xa   :  { %p457_p3 = scmp.ne.s32.totalorder %s17_s13, %s456_s21  ;;  %p462_p5 = scmp.lt.s32.totalorder %s456_s21, %s456_s21 }
   0xc   :  { %p463_p6 = por %p462_p5, %p461_p4 }
   0xe   :  { %p464_p7 = pnand %p463_p6, %p457_p3 }
  0x10   :  { %467 = shalt.err (!%p464_p7)
}
  0x11   :  { %s519_s22 = smov 64   ;;  %s520_s23 = smov 4  }
  0x12   :  { %22 = dma.hbm_to_vmem [thread:$0]  %s591_s0, 512, %s17_s13, [#allocation4], %s519_s22, %s519_s22, %s520_s23  }
  0x13   :  { %s521_s26 = smov [#allocation6]   ;;  %s468_s30 = scalar_lea.hbm %s592_s1, 1024 }
  0x14   :  { %s28_s27 = sshll.u32 %s521_s26, 4  ;;  %p469_p8 = scmp.ne.s32.totalorder %s592_s1, %s468_s30  ;;  %s29_s27 = int_to_ptr.vmem [resolvable:$true] %s28_s27 }
  0x15   :  { %p472_p9 = scmp.lt.u32.totalorder %s468_s30, %s592_s1 }
  0x17   :  { %p474_p10 = pnand %p472_p9, %p469_p8 }
  0x19   :  { %477 = shalt.err (!%p474_p10)
}
  0x1a   :  { %s478_s8 = scalar_lea.vmem %s29_s27, 1024  ;;  %p483_p12 = scmp.lt.s32.totalorder %s29_s27, %s29_s27 }
  0x1b   :  { %p479_p11 = scmp.ne.s32.totalorder %s29_s27, %s478_s8  ;;  %p484_p13 = scmp.lt.s32.totalorder %s478_s8, %s478_s8 }
  0x1d   :  { %p485_p0 = por %p484_p13, %p483_p12 }
  0x1f   :  { %p486_p1 = pnand %p485_p0, %p479_p11 }
  0x21   :  { %489 = shalt.err (!%p486_p1)
}
  0x22   :  { %34 = dma.hbm_to_vmem [thread:$0]  %s592_s1, 1024, %s29_s27, [#allocation7], %s519_s22, %s519_s22, %s520_s23  }
  0x23   :  { %512 = dma.done.wait [#allocation4], 512  }
  0x24   :  { %513 = vsyncadd [#allocation4], 4294966784 }
  0x25   :  { %514 = dma.done.wait [#allocation7], 1024  }
  0x26   :  { %515 = vsyncadd [#allocation7], 4294966272  ;;  %v434_v0 = vld [vmem:[#allocation6] sm:$0xff]   ;;  %v435_v1 = vld [vmem:[#allocation6 + $0x8] sm:$0xff]   ;;  %s522_s11 = smov [#allocation8]  }
  0x27   :  { %389 = vmatprep.subr.bf16.mxu0 %v434_v0  ;;  %413 = vmatprep.subr.bf16.mxu1 %v434_v0  ;;  %v436_v2 = vld [vmem:[#allocation6 + $0x10] sm:$0xff]   ;;  %v437_v3 = vld [vmem:[#allocation6 + $0x18] sm:$0xff]   ;;  %v442_v4 = vld [vmem:[#allocation3] sm:$0xff]   ;;  %s312_s12 = sshll.u32 %s522_s11, 4  ;;  %s313_s12 = int_to_ptr.vmem [resolvable:$true] %s312_s12 }
  0x28   :  { %390 = vmatpush3.bf16.msra.mxu0 %v434_v0  ;;  %421 = vmatpush3.bf16.msra.mxu1 %v434_v0  ;;  %v443_v5 = vld [vmem:[#allocation3 + $0x10] sm:$0xff]   ;;  %v438_v6 = vld [vmem:[#allocation6 + $0x20] sm:$0xff]   ;;  %v439_v7 = vld [vmem:[#allocation6 + $0x28] sm:$0xff]   ;;  %p495_p3 = scmp.lt.s32.totalorder %s313_s12, %s313_s12 }
  0x29   :  { %391 = vmatprep.subr.bf16.mxu0 %v435_v1  ;;  %414 = vmatprep.subr.bf16.mxu1 %v435_v1  ;;  %v440_v8 = vld [vmem:[#allocation6 + $0x30] sm:$0xff]   ;;  %v441_v9 = vld [vmem:[#allocation6 + $0x38] sm:$0xff]   ;;  %v444_v10 = vld [vmem:[#allocation3 + $0x8] sm:$0xff]  }
  0x2a   :  { %405 = vmatprep.mubr.bf16.mxu0 %v442_v4  ;;  %409 = vmatprep.mubr.bf16.mxu1 %v443_v5  ;;  %v445_v11 = vld [vmem:[#allocation3 + $0x18] sm:$0xff]   ;;  %v337_v13 = vld [vmem:[%s593_s2] ss:$0 sm:$0xff]  ;;  %s490_s2 = scalar_lea.vmem %s313_s12, 512 }
  0x2b   :  { %p491_p2 = scmp.ne.s32.totalorder %s313_s12, %s490_s2  ;;  %p496_p4 = scmp.lt.s32.totalorder %s490_s2, %s490_s2 }
  0x2c   :  { %392 = vmatpush3.bf16.msra.mxu0 %v435_v1  ;;  %422 = vmatpush3.bf16.msra.mxu1 %v435_v1 }
  0x2d   :  { %393 = vmatprep.subr.bf16.mxu0 %v436_v2  ;;  %415 = vmatprep.subr.bf16.mxu1 %v436_v2  ;;  %p497_p5 = por %p496_p4, %p495_p3 }
  0x2f   :  { %p498_p6 = pnand %p497_p5, %p491_p2 }
  0x30   :  { %394 = vmatpush3.bf16.msra.mxu0 %v436_v2  ;;  %423 = vmatpush3.bf16.msra.mxu1 %v436_v2 }
  0x31   :  { %395 = vmatprep.subr.bf16.mxu0 %v437_v3  ;;  %416 = vmatprep.subr.bf16.mxu1 %v437_v3 }
  0x34   :  { %396 = vmatpush3.bf16.msra.mxu0 %v437_v3  ;;  %424 = vmatpush3.bf16.msra.mxu1 %v437_v3 }
  0x35   :  { %397 = vmatprep.subr.bf16.mxu0 %v438_v6  ;;  %417 = vmatprep.subr.bf16.mxu1 %v438_v6 }
  0x38   :  { %398 = vmatpush3.bf16.msra.mxu0 %v438_v6  ;;  %425 = vmatpush3.bf16.msra.mxu1 %v438_v6 }
  0x39   :  { %399 = vmatprep.subr.bf16.mxu0 %v439_v7  ;;  %418 = vmatprep.subr.bf16.mxu1 %v439_v7 }
  0x3c   :  { %400 = vmatpush3.bf16.msra.mxu0 %v439_v7  ;;  %426 = vmatpush3.bf16.msra.mxu1 %v439_v7 }
  0x3d   :  { %401 = vmatprep.subr.bf16.mxu0 %v440_v8  ;;  %419 = vmatprep.subr.bf16.mxu1 %v440_v8 }
  0x40   :  { %402 = vmatpush3.bf16.msra.mxu0 %v440_v8  ;;  %427 = vmatpush3.bf16.msra.mxu1 %v440_v8 }
  0x41   :  { %403 = vmatprep.subr.bf16.mxu0 %v441_v9  ;;  %420 = vmatprep.subr.bf16.mxu1 %v441_v9 }
  0x44   :  { %404 = vmatpush3.bf16.msra.mxu0 %v441_v9  ;;  %428 = vmatpush3.bf16.msra.mxu1 %v441_v9 }
  0x47   :  { %406 = vmatmul.mubr.bf16.vlgmr.msra.gmra.mrb[0].mxu0 %v444_v10  ;;  %410 = vmatmul.mubr.bf16.vlgmr.msra.gmra.mrb[0].mxu1 %v445_v11 }
 0x11a   :  { %v407_v12 = vpop.f32.mrb[0].mxu0  ;;  %v411_v14 = vpop.f32.mrb[0].mxu1 }
 0x11b   :  { %v194_v15 = vpop.f32.mrb[1].mxu0  ;;  %v210_v16 = vpop.f32.mrb[1].mxu1  ;;  %v261_v19 = vadd.f32 %v407_v12, %v337_v13  ;;  %v265_v20 = vadd.f32 %v411_v14, %v337_v13 }
 0x11c   :  { %v408_v17 = vpop.f32.mrb[2].mxu0  ;;  %v412_v18 = vpop.f32.mrb[2].mxu1  ;;  %v259_v25 = vadd.f32 %v337_v13, %v194_v15  ;;  %v263_v26 = vadd.f32 %v337_v13, %v210_v16 }
 0x11d   :  { %v262_v21 = vadd.f32 %v408_v17, %v337_v13  ;;  %v266_v22 = vadd.f32 %v412_v18, %v337_v13  ;;  %v197_v23 = vpop.f32.mrb[3].mxu0  ;;  %v213_v24 = vpop.f32.mrb[3].mxu1 }
 0x11e   :  { %v260_v27 = vadd.f32 %v337_v13, %v197_v23  ;;  %v264_v28 = vadd.f32 %v337_v13, %v213_v24 }
 0x11f   :  { %v362_v29 = vpack.c.bf16 %v262_v21, %v261_v19  ;;  %v372_v30 = vpack.c.bf16 %v266_v22, %v265_v20 }
 0x120   :  { %v357_v31 = vpack.c.bf16 %v260_v27, %v259_v25  ;;  %v367_v32 = vpack.c.bf16 %v264_v28, %v263_v26 }
 0x121   :  { %374 = vst [vmem:[#allocation8 + $0x8] sm:$0xff] %v362_v29   ;;  %376 = vst [vmem:[#allocation8 + $0x18] sm:$0xff] %v372_v30  }
 0x122   :  { %358 = vst [vmem:[#allocation8] sm:$0xff] %v357_v31   ;;  %375 = vst [vmem:[#allocation8 + $0x10] sm:$0xff] %v367_v32  }
 0x123   :  { %501 = shalt.err (!%p498_p6)
}
 0x124   :  { %s502_s15 = scalar_lea.hbm %s594_s3, 512 }
 0x125   :  { %p503_p7 = scmp.ne.s32.totalorder %s594_s3, %s502_s15  ;;  %p506_p8 = scmp.lt.u32.totalorder %s502_s15, %s594_s3 }
 0x127   :  { %p508_p9 = pnand %p506_p8, %p503_p7 }
 0x129   :  { %511 = shalt.err (!%p508_p9)
}
 0x12a   :  { %318 = dma.vmem_to_hbm [thread:$0]  %s313_s12, 512, %s594_s3, [#allocation5], %s519_s22, %s519_s22, %s520_s23  }
 0x12b   :  { %516 = dma.done.wait [#allocation5], 512  }
 0x12c   :  { %517 = vsyncadd [#allocation5], 4294966784 }
 0x12d   :  { %322 = vsyncpa [#allocation4], 1 }
 0x12e   :  { %323 = vsyncpa [#allocation7], 1 }
 0x12f   :  { %324 = vsyncpa [#allocation5], 1 }

</bundles_post_ra>
